<compile_context>
chip_gen: v6e
topology: v6e:2x2x1
jax: 0.10.0
libtpu: 0.0.40
codegen_flags: <defaults>
</compile_context>

<pallas_src>
import functools

import jax
import jax.numpy as jnp
from jax.experimental import pallas as pl
from jax.experimental.pallas import tpu as pltpu


def _round_up(x: int, m: int) -> int:
    return ((x + m - 1) // m) * m


def _cdiv(a: int, b: int) -> int:
    return -(-a // b)


def _device_vmem_limit_bytes() -> int:
    """Generation-aware scoped-VMEM limit with headroom for compiler scratch."""
    try:
        cap = int(pltpu.get_tpu_info().vmem_capacity_bytes)
        # 3/4 of physical, capped at 64 MiB: ~48 MiB on v7x (64 MiB physical),
        # 64 MiB on v5e/v6e (128 MiB physical).
        return int(min(64 * 1024 * 1024, (cap * 3) // 4))
    except Exception:
        # Conservative fallback that is safe even on v7x's 64 MiB VMEM.
        return 32 * 1024 * 1024


def _pick_hw_tile(hw: int, n: int, c_in: int, c_out: int,
                  itemsize: int, vmem_limit_bytes: int) -> int:
    """Pick the lane-tile (multiple of 128, or full HW) for the H*W axis.

    Padding-aware: channels are padded to the f32 sublane granule (8) in VMEM,
    and the resident weight/bias block is charged against the budget. Also caps
    the tile so the grid has enough steps for pipelining / megacore, without
    dropping below ~1024 lanes (already at the HBM roofline knee).
    """
    cin_p = _round_up(c_in, 8)
    cout_p = _round_up(c_out, 8)

    # Resident weight + bias (constant index map); count a double buffer anyway.
    resident = 2 * 4 * (cout_p * max(_round_up(c_in, 128), 128) + cout_p * 128)
    # Use at most ~half the scoped limit for the streamed tiles (headroom for
    # the compiler's internal scratch and output writeback buffers).
    budget = max(vmem_limit_bytes // 2 - resident, 512 * 1024)

    # Double-buffered input + output tiles, sublane-padded channel counts.
    bytes_per_lane = 2 * itemsize * (cin_p + cout_p)
    budget_lanes = max(128, (budget // bytes_per_lane) // 128 * 128)

    if hw <= 128:
        return hw  # full-extent block (legal even when not 128-aligned)

    # Minimum-grid-steps cap: >= 2 HW tiles (pipeline overlap) and >= 4 total
    # steps (both v7x TensorCores busy), but never shrink below ~1024 lanes.
    want_tiles = max(2, _cdiv(4, max(n, 1)))
    cap_lanes = _round_up(_cdiv(hw, want_tiles), 128)
    target = min(budget_lanes, max(cap_lanes, 1024))

    if hw <= target:
        return hw  # whole image fits comfortably in one tile

    t = max(128, (min(target, hw) // 128) * 128)

    # Prefer a tile that divides HW exactly -> no masked ragged-tail stores.
    lo = max(128, (t // 2 // 128) * 128)
    for cand in range(t, lo - 1, -128):
        if hw % cand == 0:
            return cand
    return t  # ragged tail handled by the cdiv grid (masked last block only)


def _outconv_kernel(x_ref, w_ref, b_ref, o_ref, *, sig: bool, use_vpu: bool):
    # x_ref: (1, C_in, t_hw)   w_ref: (C_out, C_in)   b_ref: (C_out, 1)
    # o_ref: (1, C_out, t_hw)
    x = x_ref[0]                              # (C_in, t_hw)
    w = w_ref[...]                            # (C_out, C_in) f32

    if use_vpu:
        # Tiny channel counts: unrolled broadcast-FMA contraction on the VPU.
        c_out, c_in = w_ref.shape
        xf = x.astype(jnp.float32)
        acc = w[:, 0:1] * xf[0:1, :]          # (C_out, t_hw)
        for c in range(1, c_in):
            acc = acc + w[:, c:c + 1] * xf[c:c + 1, :]
    else:
        # 1x1 conv == channel matmul with H*W as the lane dim (MXU), f32 acc.
        acc = jnp.dot(w, x, preferred_element_type=jnp.float32)

    acc = acc + b_ref[...]                    # bias broadcast over lanes
    if sig:
        acc = jax.nn.sigmoid(acc)             # EUP transcendental
    o_ref[0] = acc.astype(o_ref.dtype)


def outconv_pallas(x_nchw, weight, bias, sig: bool):
    """1x1 Conv2d (+ optional sigmoid), matching nn.Conv2d(in_ch, out_ch, 1).

    x_nchw : (N, C_in, H, W)  (kept in its native dtype; f32 accumulation)
    weight : (C_out, C_in, 1, 1)   (PyTorch conv weight layout)
    bias   : (C_out,)
    """
    N, C_in, H, W = x_nchw.shape
    C_out = weight.shape[0]
    HW = H * W

    # NCHW-native: flatten spatial only (free reshape; no transpose, no pad).
    x3 = x_nchw.reshape(N, C_in, HW)
    w_mat = weight.reshape(C_out, C_in).astype(jnp.float32)
    b_col = bias.reshape(C_out, 1).astype(jnp.float32)

    vmem_limit = _device_vmem_limit_bytes()
    itemsize = jnp.dtype(x_nchw.dtype).itemsize
    t_hw = _pick_hw_tile(HW, N, C_in, C_out, itemsize, vmem_limit)
    grid = (N, pl.cdiv(HW, t_hw))
    use_vpu = (C_in <= 8 and C_out <= 8)

    out = pl.pallas_call(
        functools.partial(_outconv_kernel, sig=sig, use_vpu=use_vpu),
        out_shape=jax.ShapeDtypeStruct((N, C_out, HW), x_nchw.dtype),
        grid_spec=pl.GridSpec(
            grid=grid,
            in_specs=[
                # Activation tile: batch n, all channels, lane-dense HW slice.
                pl.BlockSpec((1, C_in, t_hw), lambda n, j: (n, 0, j)),
                # Weight / bias: constant index map -> resident in VMEM, no re-DMA.
                pl.BlockSpec((C_out, C_in), lambda n, j: (0, 0)),
                pl.BlockSpec((C_out, 1), lambda n, j: (0, 0)),
            ],
            out_specs=pl.BlockSpec((1, C_out, t_hw), lambda n, j: (n, 0, j)),
        ),
        compiler_params=pltpu.CompilerParams(
            # Both grid axes are independent -> shard across TCs (v7x megacore).
            dimension_semantics=("parallel", "parallel"),
            vmem_limit_bytes=vmem_limit,
        ),
    )(x3, w_mat, b_col)

    return out.reshape(N, C_out, H, W)


def _reference(x_nchw, weight, bias, sig: bool):
    # Pure-JAX reference for the 1x1 conv forward.
    w_mat = weight.reshape(weight.shape[0], weight.shape[1])  # (C_out, C_in)
    y = jnp.einsum("nchw,oc->nohw", x_nchw, w_mat) + bias[None, :, None, None]
    if sig:
        y = jax.nn.sigmoid(y)
    return y


if __name__ == "__main__":
    key = jax.random.PRNGKey(0)
    k_x, k_w, k_b = jax.random.split(key, 3)

    N, C_in, H, W = 2, 4, 16, 16
    C_out = 3
    sig = True

    x = jax.random.normal(k_x, (N, C_in, H, W), dtype=jnp.float32)
    # Deterministic synthetic parameters (nn.Conv2d(in_ch, out_ch, 1) shapes).
    fan_in = C_in  # kernel is 1x1
    bound = 1.0 / (fan_in ** 0.5)
    weight = jax.random.uniform(
        k_w, (C_out, C_in, 1, 1), minval=-bound, maxval=bound, dtype=jnp.float32
    )
    bias = jax.random.uniform(
        k_b, (C_out,), minval=-bound, maxval=bound, dtype=jnp.float32
    )

    y = outconv_pallas(x, weight, bias, sig)
    y = jax.block_until_ready(y)

    y_ref = _reference(x, weight, bias, sig)
    assert y.shape == (N, C_out, H, W)
    assert jnp.allclose(y, y_ref, atol=1e-5, rtol=1e-5), "mismatch vs reference"

    print("KERNEL_OK")
</pallas_src>

<mosaic_0001>
module attributes {stable_mosaic.version = 11 : i64} {
  func.func @_outconv_kernel(%arg0: i32, %arg1: i32, %arg2: memref<1x4x256xf32, #tpu.memory_space<vmem>>, %arg3: memref<3x4xf32, #tpu.memory_space<vmem>>, %arg4: memref<3x1xf32, #tpu.memory_space<vmem>>, %arg5: memref<1x3x256xf32, #tpu.memory_space<vmem>>) attributes {dimension_semantics = [#tpu.dimension_semantics<parallel>, #tpu.dimension_semantics<parallel>], iteration_bounds = array<i64: 2, 1>, scalar_prefetch = 0 : i64, scratch_operands = 0 : i64, tpu.core_type = #tpu.core_type<tc>, window_params = [{transform_indices = @transform_0, window_bounds = array<i64: 1, 4, 256>}, {pipeline_mode = #tpu.pipeline_mode<synchronous>, transform_indices = @transform_1, window_bounds = array<i64: 3, 4>}, {pipeline_mode = #tpu.pipeline_mode<synchronous>, transform_indices = @transform_2, window_bounds = array<i64: 3, 1>}, {transform_indices = @transform_3, window_bounds = array<i64: 1, 3, 256>}]} {
    %c0 = arith.constant 0 : index
    %c0_0 = arith.constant 0 : index
    %c0_1 = arith.constant 0 : index
    %0 = vector.load %arg2[%c0, %c0_0, %c0_1] : memref<1x4x256xf32, #tpu.memory_space<vmem>>, vector<1x4x256xf32>
    %1 = vector.shape_cast %0 : vector<1x4x256xf32> to vector<4x256xf32>
    %c0_2 = arith.constant 0 : index
    %c0_3 = arith.constant 0 : index
    %2 = vector.load %arg3[%c0_2, %c0_3] : memref<3x4xf32, #tpu.memory_space<vmem>>, vector<3x4xf32>
    %3 = vector.extract_strided_slice %2 {offsets = [0, 0], sizes = [3, 1], strides = [1, 1]} : vector<3x4xf32> to vector<3x1xf32>
    %4 = vector.extract_strided_slice %1 {offsets = [0, 0], sizes = [1, 256], strides = [1, 1]} : vector<4x256xf32> to vector<1x256xf32>
    %5 = vector.broadcast %3 : vector<3x1xf32> to vector<3x256xf32>
    %6 = vector.broadcast %4 : vector<1x256xf32> to vector<3x256xf32>
    %7 = arith.mulf %5, %6 : vector<3x256xf32>
    %8 = vector.extract_strided_slice %2 {offsets = [0, 1], sizes = [3, 1], strides = [1, 1]} : vector<3x4xf32> to vector<3x1xf32>
    %9 = vector.extract_strided_slice %1 {offsets = [1, 0], sizes = [1, 256], strides = [1, 1]} : vector<4x256xf32> to vector<1x256xf32>
    %10 = vector.broadcast %8 : vector<3x1xf32> to vector<3x256xf32>
    %11 = vector.broadcast %9 : vector<1x256xf32> to vector<3x256xf32>
    %12 = arith.mulf %10, %11 : vector<3x256xf32>
    %13 = arith.addf %7, %12 : vector<3x256xf32>
    %14 = vector.extract_strided_slice %2 {offsets = [0, 2], sizes = [3, 1], strides = [1, 1]} : vector<3x4xf32> to vector<3x1xf32>
    %15 = vector.extract_strided_slice %1 {offsets = [2, 0], sizes = [1, 256], strides = [1, 1]} : vector<4x256xf32> to vector<1x256xf32>
    %16 = vector.broadcast %14 : vector<3x1xf32> to vector<3x256xf32>
    %17 = vector.broadcast %15 : vector<1x256xf32> to vector<3x256xf32>
    %18 = arith.mulf %16, %17 : vector<3x256xf32>
    %19 = arith.addf %13, %18 : vector<3x256xf32>
    %20 = vector.extract_strided_slice %2 {offsets = [0, 3], sizes = [3, 1], strides = [1, 1]} : vector<3x4xf32> to vector<3x1xf32>
    %21 = vector.extract_strided_slice %1 {offsets = [3, 0], sizes = [1, 256], strides = [1, 1]} : vector<4x256xf32> to vector<1x256xf32>
    %22 = vector.broadcast %20 : vector<3x1xf32> to vector<3x256xf32>
    %23 = vector.broadcast %21 : vector<1x256xf32> to vector<3x256xf32>
    %24 = arith.mulf %22, %23 : vector<3x256xf32>
    %25 = arith.addf %19, %24 : vector<3x256xf32>
    %c0_4 = arith.constant 0 : index
    %c0_5 = arith.constant 0 : index
    %26 = vector.load %arg4[%c0_4, %c0_5] : memref<3x1xf32, #tpu.memory_space<vmem>>, vector<3x1xf32>
    %27 = vector.broadcast %26 : vector<3x1xf32> to vector<3x256xf32>
    %28 = arith.addf %25, %27 : vector<3x256xf32>
    %29 = arith.negf %28 : vector<3x256xf32>
    %30 = math.exp %29 : vector<3x256xf32>
    %cst = arith.constant 1.000000e+00 : f32
    %31 = vector.broadcast %cst : f32 to vector<3x256xf32>
    %32 = arith.addf %31, %30 : vector<3x256xf32>
    %33 = arith.divf %31, %32 : vector<3x256xf32>
    %c0_6 = arith.constant 0 : index
    %c0_7 = arith.constant 0 : index
    %c0_8 = arith.constant 0 : index
    %34 = vector.load %arg5[%c0_6, %c0_7, %c0_8] : memref<1x3x256xf32, #tpu.memory_space<vmem>>, vector<1x3x256xf32>
    %35 = vector.shape_cast %34 : vector<1x3x256xf32> to vector<3x256xf32>
    %36 = vector.shape_cast %33 : vector<3x256xf32> to vector<1x3x256xf32>
    tpu.vector_store %arg5[%c0_6, %c0_7, %c0_8], %36 {strides = array<i32>} : memref<1x3x256xf32, #tpu.memory_space<vmem>>, vector<1x3x256xf32>,
    return
  }
  func.func @transform_0(%arg0: i32, %arg1: i32) -> (i32, i32, i32) {
    %c0_i32 = arith.constant 0 : i32
    %c0_i32_0 = arith.constant 0 : i32
    return %arg0, %c0_i32, %arg1 : i32, i32, i32
  }
  func.func @transform_1(%arg0: i32, %arg1: i32) -> (i32, i32) {
    %c0_i32 = arith.constant 0 : i32
    %c0_i32_0 = arith.constant 0 : i32
    %c0_i32_1 = arith.constant 0 : i32
    return %c0_i32, %c0_i32_0 : i32, i32
  }
  func.func @transform_2(%arg0: i32, %arg1: i32) -> (i32, i32) {
    %c0_i32 = arith.constant 0 : i32
    %c0_i32_0 = arith.constant 0 : i32
    %c0_i32_1 = arith.constant 0 : i32
    return %c0_i32, %c0_i32_0 : i32, i32
  }
  func.func @transform_3(%arg0: i32, %arg1: i32) -> (i32, i32, i32) {
    %c0_i32 = arith.constant 0 : i32
    %c0_i32_0 = arith.constant 0 : i32
    return %arg0, %c0_i32, %arg1 : i32, i32, i32
  }
}

</mosaic_0001>

<bundles_post_ra>
// kernel: tpu_custom_call.1
= control target key start
LH: loop header
LB: loop body
LE: loop exit
PB: predicated region body
PF: predicated region fallthrough
CT: control target
= control target key end

     0   :  { %8 = vsyncpa [#allocation3], 0  ;;  %s744_s0 = inlined_call_operand.hbm [shape: f32[2,4,256], index: 0, kind: input, shape index: {}]   ;;  %s745_s1 = inlined_call_operand.vmem [shape: f32[3,4], index: 1, kind: input, shape index: {}]   ;;  %s746_s2 = inlined_call_operand.vmem [shape: f32[3,1], index: 2, kind: input, shape index: {}]   ;;  %s747_s3 = inlined_call_operand.vmem [shape: f32[2,3,256], index: 3, kind: output, shape index: {}]  }
   0x1   :  { %10 = vsyncpa [#allocation3 + $0x1], 0  ;;  %s638_s12 = smov 0   ;;  %s640_s13 = smov 0  }
   0x2   :  { %s642_s14 = smov 0   ;;  %s644_s15 = smov 0  }
   0x3   :  { %s646_s16 = smov 0   ;;  %s648_s17 = smov 0  }
   0x4 LB: > { %s443_s18 = sadd.s32 4294967295, %s611_s17   ;;  %s28_s19 = sadd.s32 1, %s607_s16  ;;  %s611_s17 = sphi %s648_s17, %s16_s17   ;;  %s607_s16 = sphi %s646_s16, %s755_s16   ;;  %s603_s15 = sphi %s644_s15, %s754_s15   ;;  %s599_s14 = sphi %s642_s14, %s753_s14   ;;  %s595_s13 = sphi %s640_s13, %s752_s13   ;;  %s591_s12 = sphi %s638_s12, %s751_s12  }
   0x5   : > { %p30_p0 = scmp.ge.s32.totalorder %s28_s19, 2  ;;  %s37_s20 = sadd.s32 1, %s599_s14 }
   0x6   : > { %p44_p1 = scmp.ne.s32.totalorder %s599_s14, %s595_s13  ;;  %p45_p2 = scmp.eq.s32.totalorder %s611_s17, 0 }
   0x7   : > { %s757_s19 = smov (%p30_p0, %s28_s19), 0  ;;  %p50_p4 = scmp.ne.s32.totalorder %s595_s13, %s591_s12 }
   0x8   : > { %p674_p3 = por %p45_p2, %p44_p1  ;;  %s32_s22 = ssub.s32 %s607_s16, %s757_s19 }
   0x9   : > { %p51_p5 = scmp.eq.s32.totalorder %s443_s18, 0  ;;  %p35_p6 = scmp.eq.s32.totalorder %s32_s22, 0 }
   0xa   : > { %p466_p8 = scmp.lt.s32.totalorder %s611_s17, 2  ;;  %s150_s25 = sand.u32 1, %s599_s14  }
   0xb   : > { %p681_p7 = por %p51_p5, %p50_p4  ;;  %s458_s26 = sshll.u32 %s607_s16, 7 }
   0xc   : > { %s687_s24 = scalar_select %p35_p6, %s599_s14, %s37_s20  }
   0xd   : > { %s447_s27 = sshll.u32 %s150_s25, 3  ;;  %s162_s30 = scalar_lea.hbm %s744_s0, %s458_s26 }
   0xe   : > { %s154_s4 = scalar_lea.vmem [#allocation2], %s447_s27  ;;  %p696_p9 = pnand %p466_p8, %p674_p3 }
   0xf   : > { %s164_s5 = sshll.u32 %s154_s4, 4  ;;  %p450_p10 = scmp.ge.s32.totalorder %s611_s17, 1  ;;  %s165_s5 = int_to_ptr.vmem [resolvable:$true] %s164_s5 }
  0x10   : > { %p169_p11 = scmp.lt.s32.totalorder %s611_s17, 3  ;;  %s151_s7 = scalar_lea.sflag [#allocation3], %s150_s25 }
  0x11   : > { %p535_p12 = pneg %p696_p9  ;;  %s546_s8 = scalar_lea.vmem %s165_s5, 128 }
  0x12   : > { %p547_p13 = scmp.ne.s32.totalorder %s165_s5, %s546_s8  ;;  %s613_s9 = smov [#allocation2]  }
  0x13   : > { %s551_s10 = sshll.u32 %s613_s9, 4  ;;  %s552_s10 = int_to_ptr.vmem [resolvable:$false] %s551_s10 }
  0x14   : > { %p549_p0 = pnand %p547_p13, %p535_p12  ;;  %s553_s11 = scalar_lea.vmem %s552_s10, 256 }
  0x15   : > { %p554_p2 = scmp.lt.s32.totalorder %s165_s5, %s552_s10  ;;  %p555_p3 = scmp.lt.s32.totalorder %s553_s11, %s546_s8 }
  0x16   : > { %p550_p1 = pneg %p549_p0 }
  0x17   : > { %p556_p4 = por %p555_p3, %p554_p2 }
  0x19   : > { %p557_p5 = pnand %p556_p4, %p550_p1 }
  0x1b   : > { %560 = shalt.err (!%p557_p5)
}
  0x1c   : > { %465 = dma.hbm_to_vmem [thread:$0]  (!%p696_p9), %s162_s30, 128, %s165_s5, %s151_s7  }
  0x1d   : > { %p170_p6 = pnand %p450_p10, %p169_p11 }
  0x1e   : > { %s175_s12 = sand.u32 (!%p170_p6), 1, %s595_s13  }
  0x1f   : > { %173 = sbr.rel (%p170_p6) target bundleno = 214 (0xd6), region = 32  ;;  %s451_s18 = sshll.u32 (!%p170_p6), %s175_s12, 3 }
  0x20   : > { %s176_s20 = scalar_lea.sflag (!%p170_p6), [#allocation3], %s175_s12  ;;  %s179_s21 = scalar_lea.vmem (!%p170_p6), [#allocation2], %s451_s18 }
  0x24   : > { %586 = dma.done.wait (%p681_p7), %s176_s20, 128  }
  0x25   : > { %588 = vsyncadd (%p681_p7), %s176_s20, 4294967168  ;;  %v614_v0 = vmov 0   ;;  %v615_v1 = vmov 2   ;;  %v218_v2 = vld [vmem:[%s745_s1] sm:$0x7]  ;;  %v616_v3 = vmov 1   ;;  %v225_v6 = vlaneseq }
  0x26   : > { %519 = vset.pattern.permute.xlu0 %v614_v0  ;;  %521 = vset.pattern.permute.xlu1 %v615_v1  ;;  %v617_v4 = vmov 3   ;;  %v323_v5 = vld [vmem:[%s746_s2] sm:$0x7]  ;;  %p208_p7 = scmp.lt.s32.totalorder %s603_s15, 1 }
  0x27   : > { %221 = vperm.xlu0 %519, %v218_v2   ;;  %272 = vperm.xlu1 %521, %v218_v2   ;;  %v226_v7 = vshrl.u32 %v225_v6, 7  ;;  %v217_v12 = vld [vmem:[%s179_s21] sm:$0xff] }
  0x28   : > { %s759_s15 = smov (!%p208_p7, %s603_s15), 1 }
  0x29   : > { %v227_v8 = vsub.s32 0, %v226_v7  ;;  %v231_v9 = vsub.s32 4, %v226_v7  ;;  %v251_v10 = vsub.s32 1, %v226_v7  ;;  %v255_v11 = vsub.s32 5, %v226_v7  ;;  %s459_s23 = sshll.u32 %s759_s15, 3 }
  0x2a   : > { %v277_v13 = vsub.s32 2, %v226_v7  ;;  %v281_v14 = vsub.s32 6, %v226_v7  ;;  %v303_v15 = vsub.s32 3, %v226_v7  ;;  %v307_v16 = vsub.s32 7, %v226_v7  ;;  %s215_s30 = scalar_lea.vmem %s747_s3, %s459_s23 }
  0x2b   : > { %520 = vset.pattern.permute.xlu0 %v616_v3  ;;  %522 = vset.pattern.permute.xlu1 %v617_v4  ;;  %v228_v17 = vrot.slane %v217_v12, %v227_v8  ;;  %v232_v18 = vrot.slane %v217_v12, %v231_v9  ;;  %v252_v19 = vrot.slane %v217_v12, %v251_v10 }
  0x2c   : > { %246 = vperm.xlu0 %520, %v218_v2   ;;  %298 = vperm.xlu1 %522, %v218_v2   ;;  %v256_v20 = vrot.slane %v217_v12, %v255_v11  ;;  %v278_v21 = vrot.slane %v217_v12, %v277_v13  ;;  %v282_v22 = vrot.slane %v217_v12, %v281_v14 }
  0x2d   : > { %v304_v25 = vrot.slane %v217_v12, %v303_v15  ;;  %v308_v26 = vrot.slane %v217_v12, %v307_v16  ;;  %v238_v27 = vrot.slane %v228_v17, %v227_v8  ;;  %v242_v28 = vrot.slane %v232_v18, %v227_v8 }
  0x2e   : > { %v262_v29 = vrot.slane %v252_v19, %v251_v10  ;;  %v266_v30 = vrot.slane %v256_v20, %v251_v10  ;;  %v288_v31 = vrot.slane %v278_v21, %v277_v13  ;;  %v292_v32 = vrot.slane %v282_v22, %v277_v13 }
  0x2f   : > { %v314_v33 = vrot.slane %v304_v25, %v303_v15  ;;  %v318_v34 = vrot.slane %v308_v26, %v303_v15 }
  0x30   : > { %523 = vset.pattern.permute.xlu1 %v614_v0  ;;  %524 = vset.pattern.permute.xlu0 %v614_v0 }
  0x31   : > { %326 = vperm.xlu1 %523, %v323_v5  }
  0xa2   : > { %v222_v23 = vpop.permute.xlu0 %221  ;;  %v273_v24 = vpop.permute.xlu1 %272 }
  0xa3   : > { %v243_v37 = vmul.f32 %v238_v27, %v222_v23  ;;  %v244_v38 = vmul.f32 %v242_v28, %v222_v23  ;;  %v293_v41 = vmul.f32 %v288_v31, %v273_v24  ;;  %v294_v42 = vmul.f32 %v292_v32, %v273_v24 }
  0xa7   : > { %v247_v35 = vpop.permute.xlu0 %246  ;;  %v299_v36 = vpop.permute.xlu1 %298 }
  0xa8   : > { %v267_v39 = vmul.f32 %v262_v29, %v247_v35  ;;  %v268_v40 = vmul.f32 %v266_v30, %v247_v35  ;;  %v319_v45 = vmul.f32 %v314_v33, %v299_v36  ;;  %v320_v46 = vmul.f32 %v318_v34, %v299_v36 }
  0xaa   : > { %v269_v43 = vadd.f32 %v267_v39, %v243_v37  ;;  %v270_v44 = vadd.f32 %v268_v40, %v244_v38 }
  0xac   : > { %v295_v47 = vadd.f32 %v293_v41, %v269_v43  ;;  %v296_v48 = vadd.f32 %v294_v42, %v270_v44  ;;  %v327_v49 = vpop.permute.xlu1 %326 }
  0xae   : > { %v321_v50 = vadd.f32 %v319_v45, %v295_v47  ;;  %v322_v51 = vadd.f32 %v320_v46, %v296_v48 }
  0xb0   : > { %v329_v52 = vadd.f32 %v327_v49, %v321_v50  ;;  %v330_v53 = vadd.f32 %v327_v49, %v322_v51 }
  0xb2   : > { %v454_v54 = vmul.f32 -1.442695, %v329_v52  ;;  %v455_v55 = vmul.f32 -1.442695, %v330_v53 }
  0xb4   : > { %525 = vpow2.f32 %v454_v54 }
  0xb5   : > { %527 = vpow2.f32 %v455_v55 }
  0xc1   : > { %v526_v56 = vpop.eup %525 }
  0xc2   : > { %v528_v57 = vpop.eup %527  ;;  %v337_v58 = vadd.f32 1.0, %v526_v56 }
  0xc3   : > { %v338_v59 = vadd.f32 1.0, %v528_v57 }
  0xc4   : > { %529 = vrcp.f32 %v337_v58 }
  0xc5   : > { %531 = vrcp.f32 %v338_v59 }
  0xd1   : > { %v530_v60 = vpop.eup %529 }
  0xd2   : > { %v532_v61 = vpop.eup %531 }
  0xd3   : > { %v345_v62 = vcombine.low %v530_v60, %v532_v61 }
  0xd5   : > { %347 = vst [vmem:[%s215_s30] sm:$0x77] %v345_v62 }
  0xd6 PF: > { %s16_s17 = sadd.s32 1, %s611_s17   ;;  %s751_s12 = smov %s595_s13 }
  0xd7   : > { %p13_p8 = scmp.ge.s32.totalorder %s16_s17, 4   ;;  %s752_s13 = smov %s599_s14 }
  0xd8   : > { %s753_s14 = smov %s687_s24  ;;  %s754_s15 = smov %s607_s16 }
  0xd9   : > { %s755_s16 = smov %s757_s19  ;;  %15 = sbr.rel (!%p13_p8) target bundleno = 4 (0x4), region = 72 }
  0xde   :  { %378 = vsyncpa [#allocation3], 1 }
  0xdf   :  { %380 = vsyncpa [#allocation3 + $0x1], 1 }

</bundles_post_ra>
